<compile_context>
chip_gen: v7x
topology: tpu7x:2x2x1
jax: 0.10.0
libtpu: 0.0.40
codegen_flags: <defaults>
</compile_context>

<pallas_src>
import functools

import jax
import jax.numpy as jnp
from jax.experimental import pallas as pl
from jax.experimental.pallas import tpu as pltpu

P_DROP = 0.5
OUT_PAD = 128          # lane-dense padded width for the 4-wide fc4 output
DEFAULT_MAX_TILE_B = 1024


def _round_up(n, m):
    return (n + m - 1) // m * m


def qnet_kernel(x_ref,
                w1_ref, b1_ref,
                w2_ref, b2_ref,
                w3_ref, b3_ref,
                w4_ref, b4_ref,
                *rest,
                training: bool):
    if training:
        m1_ref, m2_ref, o_ref = rest
    else:
        (o_ref,) = rest

    cd = w1_ref.dtype                     # bf16 MXU operands, f32 accumulation
    x = x_ref[...]                        # (TILE_B, 16) f32

    # fc1 + relu (+ dropout)
    h = jnp.dot(x.astype(cd), w1_ref[...],
                preferred_element_type=jnp.float32) + b1_ref[...]
    h = jnp.maximum(h, 0.0)               # (TILE_B, 64)
    if training:
        h = h * m1_ref[...]               # mask is pre-scaled {0, 1/(1-p)}

    # fc2 + relu (+ dropout)
    h = jnp.dot(h.astype(cd), w2_ref[...],
                preferred_element_type=jnp.float32) + b2_ref[...]
    h = jnp.maximum(h, 0.0)               # (TILE_B, 128)
    if training:
        h = h * m2_ref[...]

    # fc3 + relu
    h = jnp.dot(h.astype(cd), w3_ref[...],
                preferred_element_type=jnp.float32) + b3_ref[...]
    h = jnp.maximum(h, 0.0)               # (TILE_B, 64)

    # fc4 (lane-dense padded to 128 columns; cols 4..127 are zero)
    out = jnp.dot(h.astype(cd), w4_ref[...],
                  preferred_element_type=jnp.float32) + b4_ref[...]
    o_ref[...] = out.astype(o_ref.dtype)  # (TILE_B, 128)


def qnetwork_dropout_forward(x, params, *, dropout_masks=None,
                             max_tile_b=DEFAULT_MAX_TILE_B,
                             compute_dtype=jnp.bfloat16):
    """Fused forward pass. x: (B, 16) f32 -> (B, 4) f32.

    dropout_masks: None (eval mode, dropout = identity) or a pair of
    pre-scaled keep masks (B, 64) and (B, 128) with values {0, 1/(1-p)}.
    """
    w1, b1, w2, b2, w3, b3, w4, b4 = params
    B = x.shape[0]
    training = dropout_masks is not None

    # MXU-friendly weight dtypes; fc4 padded to a lane-dense 128-wide slab.
    w1c = w1.astype(compute_dtype)
    w2c = w2.astype(compute_dtype)
    w3c = w3.astype(compute_dtype)
    w4p = jnp.zeros((w4.shape[0], OUT_PAD), compute_dtype)
    w4p = w4p.at[:, : w4.shape[1]].set(w4.astype(compute_dtype))
    b1r = b1.reshape(1, -1).astype(jnp.float32)
    b2r = b2.reshape(1, -1).astype(jnp.float32)
    b3r = b3.reshape(1, -1).astype(jnp.float32)
    b4p = jnp.zeros((1, OUT_PAD), jnp.float32).at[:, : b4.shape[0]].set(b4)

    # Batch tiling: biggest tile up to max_tile_b, multiple of 8 sublanes.
    tile_b = min(max_tile_b, _round_up(B, 8))
    Bp = _round_up(B, tile_b)
    xp = x if Bp == B else jnp.pad(x, ((0, Bp - B), (0, 0)))
    grid = (Bp // tile_b,)

    def batch_spec(feat):
        return pl.BlockSpec((tile_b, feat), lambda i: (i, 0))

    def resident(arr):  # constant block index -> stays VMEM-resident
        return pl.BlockSpec(arr.shape, lambda i: (0, 0))

    inputs = [xp, w1c, b1r, w2c, b2r, w3c, b3r, w4p, b4p]
    in_specs = [batch_spec(16),
                resident(w1c), resident(b1r),
                resident(w2c), resident(b2r),
                resident(w3c), resident(b3r),
                resident(w4p), resident(b4p)]

    if training:
        m1, m2 = dropout_masks
        m1 = m1.astype(jnp.float32)
        m2 = m2.astype(jnp.float32)
        if Bp != B:
            m1 = jnp.pad(m1, ((0, Bp - B), (0, 0)))
            m2 = jnp.pad(m2, ((0, Bp - B), (0, 0)))
        inputs += [m1, m2]
        in_specs += [batch_spec(64), batch_spec(128)]

    kernel = functools.partial(qnet_kernel, training=training)

    out = pl.pallas_call(
        kernel,
        out_shape=jax.ShapeDtypeStruct((Bp, OUT_PAD), jnp.float32),
        grid=grid,
        in_specs=in_specs,
        out_specs=pl.BlockSpec((tile_b, OUT_PAD), lambda i: (i, 0)),
        compiler_params=pltpu.CompilerParams(
            dimension_semantics=("parallel",)),
    )(*inputs)

    return out[:B, :4]


def init_params(key):
    """PyTorch-style U(-1/sqrt(in), 1/sqrt(in)) init; weights stored (in, out)."""
    dims = [(16, 64), (64, 128), (128, 64), (64, 4)]
    params = []
    for din, dout in dims:
        key, kw, kb = jax.random.split(key, 3)
        bound = 1.0 / jnp.sqrt(din)
        w = jax.random.uniform(kw, (din, dout), jnp.float32, -bound, bound)
        b = jax.random.uniform(kb, (dout,), jnp.float32, -bound, bound)
        params += [w, b]
    return tuple(params)


def reference_forward(x, params, masks=None, compute_dtype=jnp.bfloat16):
    """Plain-JAX reference using the same bf16-operand / f32-accum matmuls."""
    w1, b1, w2, b2, w3, b3, w4, b4 = params
    cd = compute_dtype

    def lin(h, w, b):
        return jnp.dot(h.astype(cd), w.astype(cd),
                       preferred_element_type=jnp.float32) + b

    h = jnp.maximum(lin(x, w1, b1), 0.0)
    if masks is not None:
        h = h * masks[0]
    h = jnp.maximum(lin(h, w2, b2), 0.0)
    if masks is not None:
        h = h * masks[1]
    h = jnp.maximum(lin(h, w3, b3), 0.0)
    return lin(h, w4, b4)


if __name__ == "__main__":
    key = jax.random.PRNGKey(0)
    key, kx, kp, km1, km2 = jax.random.split(key, 5)

    B = 8
    x = jax.random.normal(kx, (B, 16), dtype=jnp.float32)
    params = init_params(kp)

    # --- Eval mode (dropout = identity), deterministic path ---
    out = qnetwork_dropout_forward(x, params)
    out = jax.block_until_ready(out)
    assert out.shape == (B, 4)
    ref = reference_forward(x, params)
    assert jnp.allclose(out, ref, atol=1e-3, rtol=1e-3), "eval mismatch vs reference"

    # --- Training mode with externally supplied (deterministic) masks ---
    keep1 = jax.random.bernoulli(km1, 1.0 - P_DROP, (B, 64))
    keep2 = jax.random.bernoulli(km2, 1.0 - P_DROP, (B, 128))
    m1 = keep1.astype(jnp.float32) / (1.0 - P_DROP)   # values {0, 2}
    m2 = keep2.astype(jnp.float32) / (1.0 - P_DROP)
    out_t = qnetwork_dropout_forward(x, params, dropout_masks=(m1, m2))
    out_t = jax.block_until_ready(out_t)
    assert out_t.shape == (B, 4)
    ref_t = reference_forward(x, params, masks=(m1, m2))
    assert jnp.allclose(out_t, ref_t, atol=1e-3, rtol=1e-3), "train mismatch vs reference"

    print("KERNEL_OK")
</pallas_src>

<mosaic_0001>
module attributes {stable_mosaic.version = 11 : i64} {
  func.func @qnet_kernel(%arg0: i32, %arg1: memref<8x16xf32, #tpu.memory_space<vmem>>, %arg2: memref<16x64xbf16, #tpu.memory_space<vmem>>, %arg3: memref<1x64xf32, #tpu.memory_space<vmem>>, %arg4: memref<64x128xbf16, #tpu.memory_space<vmem>>, %arg5: memref<1x128xf32, #tpu.memory_space<vmem>>, %arg6: memref<128x64xbf16, #tpu.memory_space<vmem>>, %arg7: memref<1x64xf32, #tpu.memory_space<vmem>>, %arg8: memref<64x128xbf16, #tpu.memory_space<vmem>>, %arg9: memref<1x128xf32, #tpu.memory_space<vmem>>, %arg10: memref<8x128xf32, #tpu.memory_space<vmem>>) attributes {dimension_semantics = [#tpu.dimension_semantics<parallel>], iteration_bounds = array<i64: 1>, scalar_prefetch = 0 : i64, scratch_operands = 0 : i64, tpu.core_type = #tpu.core_type<tc>, window_params = [{transform_indices = @transform_0, window_bounds = array<i64: 8, 16>}, {pipeline_mode = #tpu.pipeline_mode<synchronous>, transform_indices = @transform_1, window_bounds = array<i64: 16, 64>}, {pipeline_mode = #tpu.pipeline_mode<synchronous>, transform_indices = @transform_2, window_bounds = array<i64: 1, 64>}, {pipeline_mode = #tpu.pipeline_mode<synchronous>, transform_indices = @transform_3, window_bounds = array<i64: 64, 128>}, {pipeline_mode = #tpu.pipeline_mode<synchronous>, transform_indices = @transform_4, window_bounds = array<i64: 1, 128>}, {pipeline_mode = #tpu.pipeline_mode<synchronous>, transform_indices = @transform_5, window_bounds = array<i64: 128, 64>}, {pipeline_mode = #tpu.pipeline_mode<synchronous>, transform_indices = @transform_6, window_bounds = array<i64: 1, 64>}, {pipeline_mode = #tpu.pipeline_mode<synchronous>, transform_indices = @transform_7, window_bounds = array<i64: 64, 128>}, {pipeline_mode = #tpu.pipeline_mode<synchronous>, transform_indices = @transform_8, window_bounds = array<i64: 1, 128>}, {transform_indices = @transform_9, window_bounds = array<i64: 8, 128>}]} {
    %c0 = arith.constant 0 : index
    %c0_0 = arith.constant 0 : index
    %0 = vector.load %arg1[%c0, %c0_0] : memref<8x16xf32, #tpu.memory_space<vmem>>, vector<8x16xf32>
    %1 = arith.truncf %0 : vector<8x16xf32> to vector<8x16xbf16>
    %c0_1 = arith.constant 0 : index
    %c0_2 = arith.constant 0 : index
    %2 = vector.load %arg2[%c0_1, %c0_2] : memref<16x64xbf16, #tpu.memory_space<vmem>>, vector<16x64xbf16>
    %cst = arith.constant dense<0.000000e+00> : vector<8x64xf32>
    %3 = tpu.matmul %1, %2, %cst {dimension_numbers = #tpu.dot_dimension_numbers<[1], [0], [0], [1], [0, 0, 1, 1], [], []>} : vector<8x16xbf16>, vector<16x64xbf16>, vector<8x64xf32> -> vector<8x64xf32>
    %c0_3 = arith.constant 0 : index
    %c0_4 = arith.constant 0 : index
    %4 = vector.load %arg3[%c0_3, %c0_4] : memref<1x64xf32, #tpu.memory_space<vmem>>, vector<1x64xf32>
    %5 = vector.broadcast %4 : vector<1x64xf32> to vector<8x64xf32>
    %6 = arith.addf %3, %5 : vector<8x64xf32>
    %cst_5 = arith.constant 0.000000e+00 : f32
    %7 = vector.broadcast %cst_5 : f32 to vector<8x64xf32>
    %8 = arith.maximumf %6, %7 : vector<8x64xf32>
    %9 = arith.truncf %8 : vector<8x64xf32> to vector<8x64xbf16>
    %c0_6 = arith.constant 0 : index
    %c0_7 = arith.constant 0 : index
    %10 = vector.load %arg4[%c0_6, %c0_7] : memref<64x128xbf16, #tpu.memory_space<vmem>>, vector<64x128xbf16>
    %cst_8 = arith.constant dense<0.000000e+00> : vector<8x128xf32>
    %11 = tpu.matmul %9, %10, %cst_8 {dimension_numbers = #tpu.dot_dimension_numbers<[1], [0], [0], [1], [0, 0, 1, 1], [], []>} : vector<8x64xbf16>, vector<64x128xbf16>, vector<8x128xf32> -> vector<8x128xf32>
    %c0_9 = arith.constant 0 : index
    %c0_10 = arith.constant 0 : index
    %12 = vector.load %arg5[%c0_9, %c0_10] : memref<1x128xf32, #tpu.memory_space<vmem>>, vector<1x128xf32>
    %13 = vector.broadcast %12 : vector<1x128xf32> to vector<8x128xf32>
    %14 = arith.addf %11, %13 : vector<8x128xf32>
    %cst_11 = arith.constant 0.000000e+00 : f32
    %15 = vector.broadcast %cst_11 : f32 to vector<8x128xf32>
    %16 = arith.maximumf %14, %15 : vector<8x128xf32>
    %17 = arith.truncf %16 : vector<8x128xf32> to vector<8x128xbf16>
    %c0_12 = arith.constant 0 : index
    %c0_13 = arith.constant 0 : index
    %18 = vector.load %arg6[%c0_12, %c0_13] : memref<128x64xbf16, #tpu.memory_space<vmem>>, vector<128x64xbf16>
    %cst_14 = arith.constant dense<0.000000e+00> : vector<8x64xf32>
    %19 = tpu.matmul %17, %18, %cst_14 {dimension_numbers = #tpu.dot_dimension_numbers<[1], [0], [0], [1], [0, 0, 1, 1], [], []>} : vector<8x128xbf16>, vector<128x64xbf16>, vector<8x64xf32> -> vector<8x64xf32>
    %c0_15 = arith.constant 0 : index
    %c0_16 = arith.constant 0 : index
    %20 = vector.load %arg7[%c0_15, %c0_16] : memref<1x64xf32, #tpu.memory_space<vmem>>, vector<1x64xf32>
    %21 = vector.broadcast %20 : vector<1x64xf32> to vector<8x64xf32>
    %22 = arith.addf %19, %21 : vector<8x64xf32>
    %cst_17 = arith.constant 0.000000e+00 : f32
    %23 = vector.broadcast %cst_17 : f32 to vector<8x64xf32>
    %24 = arith.maximumf %22, %23 : vector<8x64xf32>
    %25 = arith.truncf %24 : vector<8x64xf32> to vector<8x64xbf16>
    %c0_18 = arith.constant 0 : index
    %c0_19 = arith.constant 0 : index
    %26 = vector.load %arg8[%c0_18, %c0_19] : memref<64x128xbf16, #tpu.memory_space<vmem>>, vector<64x128xbf16>
    %cst_20 = arith.constant dense<0.000000e+00> : vector<8x128xf32>
    %27 = tpu.matmul %25, %26, %cst_20 {dimension_numbers = #tpu.dot_dimension_numbers<[1], [0], [0], [1], [0, 0, 1, 1], [], []>} : vector<8x64xbf16>, vector<64x128xbf16>, vector<8x128xf32> -> vector<8x128xf32>
    %c0_21 = arith.constant 0 : index
    %c0_22 = arith.constant 0 : index
    %28 = vector.load %arg9[%c0_21, %c0_22] : memref<1x128xf32, #tpu.memory_space<vmem>>, vector<1x128xf32>
    %29 = vector.broadcast %28 : vector<1x128xf32> to vector<8x128xf32>
    %30 = arith.addf %27, %29 : vector<8x128xf32>
    %c0_23 = arith.constant 0 : index
    %c0_24 = arith.constant 0 : index
    %31 = vector.load %arg10[%c0_23, %c0_24] : memref<8x128xf32, #tpu.memory_space<vmem>>, vector<8x128xf32>
    tpu.vector_store %arg10[%c0_23, %c0_24], %30 {strides = array<i32>} : memref<8x128xf32, #tpu.memory_space<vmem>>, vector<8x128xf32>,
    return
  }
  func.func @transform_0(%arg0: i32) -> (i32, i32) {
    %c0_i32 = arith.constant 0 : i32
    %c0_i32_0 = arith.constant 0 : i32
    return %arg0, %c0_i32 : i32, i32
  }
  func.func @transform_1(%arg0: i32) -> (i32, i32) {
    %c0_i32 = arith.constant 0 : i32
    %c0_i32_0 = arith.constant 0 : i32
    %c0_i32_1 = arith.constant 0 : i32
    return %c0_i32, %c0_i32_0 : i32, i32
  }
  func.func @transform_2(%arg0: i32) -> (i32, i32) {
    %c0_i32 = arith.constant 0 : i32
    %c0_i32_0 = arith.constant 0 : i32
    %c0_i32_1 = arith.constant 0 : i32
    return %c0_i32, %c0_i32_0 : i32, i32
  }
  func.func @transform_3(%arg0: i32) -> (i32, i32) {
    %c0_i32 = arith.constant 0 : i32
    %c0_i32_0 = arith.constant 0 : i32
    %c0_i32_1 = arith.constant 0 : i32
    return %c0_i32, %c0_i32_0 : i32, i32
  }
  func.func @transform_4(%arg0: i32) -> (i32, i32) {
    %c0_i32 = arith.constant 0 : i32
    %c0_i32_0 = arith.constant 0 : i32
    %c0_i32_1 = arith.constant 0 : i32
    return %c0_i32, %c0_i32_0 : i32, i32
  }
  func.func @transform_5(%arg0: i32) -> (i32, i32) {
    %c0_i32 = arith.constant 0 : i32
    %c0_i32_0 = arith.constant 0 : i32
    %c0_i32_1 = arith.constant 0 : i32
    return %c0_i32, %c0_i32_0 : i32, i32
  }
  func.func @transform_6(%arg0: i32) -> (i32, i32) {
    %c0_i32 = arith.constant 0 : i32
    %c0_i32_0 = arith.constant 0 : i32
    %c0_i32_1 = arith.constant 0 : i32
    return %c0_i32, %c0_i32_0 : i32, i32
  }
  func.func @transform_7(%arg0: i32) -> (i32, i32) {
    %c0_i32 = arith.constant 0 : i32
    %c0_i32_0 = arith.constant 0 : i32
    %c0_i32_1 = arith.constant 0 : i32
    return %c0_i32, %c0_i32_0 : i32, i32
  }
  func.func @transform_8(%arg0: i32) -> (i32, i32) {
    %c0_i32 = arith.constant 0 : i32
    %c0_i32_0 = arith.constant 0 : i32
    %c0_i32_1 = arith.constant 0 : i32
    return %c0_i32, %c0_i32_0 : i32, i32
  }
  func.func @transform_9(%arg0: i32) -> (i32, i32) {
    %c0_i32 = arith.constant 0 : i32
    %c0_i32_0 = arith.constant 0 : i32
    return %arg0, %c0_i32 : i32, i32
  }
}

</mosaic_0001>

<bundles_post_ra>
// kernel: tpu_custom_call.1
= control target key start
LH: loop header
LB: loop body
LE: loop exit
PB: predicated region body
PF: predicated region fallthrough
CT: control target
= control target key end

     0   :  { %v531_v1 = vmov 0.0   ;;  %vm51_vm0 = vcmask 130048   ;;  %vm532_vm1 = vmmov 0   ;;  %s689_s0 = inlined_call_operand.vmem [shape: f32[8,16], index: 0, kind: input, shape index: {}]   ;;  %s690_s1 = inlined_call_operand.vmem [shape: bf16[16,64], index: 1, kind: input, shape index: {}]   ;;  %s691_s2 = inlined_call_operand.vmem [shape: f32[1,64], index: 2, kind: input, shape index: {}]   ;;  %s692_s3 = inlined_call_operand.vmem [shape: bf16[64,128], index: 3, kind: input, shape index: {}]   ;;  %s693_s4 = inlined_call_operand.vmem [shape: f32[1,128], index: 4, kind: input, shape index: {}]   ;;  %s694_s5 = inlined_call_operand.vmem [shape: bf16[128,64], index: 5, kind: input, shape index: {}]   ;;  %s695_s6 = inlined_call_operand.vmem [shape: f32[1,64], index: 6, kind: input, shape index: {}]   ;;  %s696_s7 = inlined_call_operand.vmem [shape: bf16[64,128], index: 7, kind: input, shape index: {}]   ;;  %s697_s8 = inlined_call_operand.vmem [shape: f32[1,128], index: 8, kind: input, shape index: {}]   ;;  %s698_s9 = inlined_call_operand.hbm [shape: f32[8,128], index: 9, kind: output, shape index: {}]  }
   0x1   :  { %v490_v0 = vld [vmem:[%s690_s1] sm:$0xff]   ;;  %437 = vmatprep.subr.bf16.mxu0 %v531_v1  ;;  %443 = vmatprep.subr.bf16.mxu1 %v531_v1  ;;  %v492_v5 = vld [vmem:[%s692_s3 + $0x8] sm:$0xff]  }
   0x2   :  { %v34_v2 = vld [vmem:[%s689_s0] sm:$0xff]  ;;  %438 = vmatpush3.bf16.msra.mxu0 %v490_v0  ;;  %439 = vmatprep.mubr.msk.bf16.mxu0 %vm532_vm1, %v531_v1 }
   0x3   :  { %v491_v3 = vld [vmem:[%s692_s3] sm:$0xff]   ;;  %v35_v4 = vpack.c.bf16 %v34_v2, %v34_v2  ;;  %451 = vmatprep.mubr.msk.bf16.mxu1 %vm532_vm1, %v531_v1  ;;  %455 = vmatprep.subr.bf16.mxu0 %v531_v1 }
   0x4   :  { %444 = vmatpush3.bf16.msra.mxu1 %v491_v3 }
   0x5   :  { %445 = vmatprep.subr.bf16.mxu1 %v531_v1  ;;  %440 = vmatmul.mubr.msk.bf16.vlgmr.msra.gmra.mrb[0].mxu0 %vm51_vm0, %v35_v4 }
   0x6   :  { %471 = vmatprep.mubr.msk.bf16.mxu0 %vm532_vm1, %v531_v1 }
   0x8   :  { %446 = vmatpush3.bf16.msra.mxu1 %v492_v5 }
   0x9   :  { %447 = vmatprep.subr.bf16.mxu1 %v531_v1 }
   0xa   :  { %14 = vsyncpa [#allocation3], 0  ;;  %v493_v6 = vld [vmem:[%s692_s3 + $0x10] sm:$0xff]   ;;  %v494_v7 = vld [vmem:[%s692_s3 + $0x18] sm:$0xff]   ;;  %vm136_vm2 = vcmask 523264   ;;  %s533_s24 = smov [#allocation2]  }
   0xb   :  { %v495_v8 = vld [vmem:[%s694_s5] sm:$0xff]   ;;  %v496_v9 = vld [vmem:[%s694_s5 + $0x8] sm:$0xff]   ;;  %v497_v10 = vld [vmem:[%s694_s5 + $0x10] sm:$0xff]  }
   0xc   :  { %448 = vmatpush3.bf16.msra.mxu1 %v493_v6  ;;  %456 = vmatpush3.bf16.msra.mxu0 %v495_v8  ;;  %v498_v11 = vld [vmem:[%s694_s5 + $0x18] sm:$0xff]   ;;  %v499_v12 = vld [vmem:[%s694_s5 + $0x20] sm:$0xff]   ;;  %v500_v13 = vld [vmem:[%s694_s5 + $0x28] sm:$0xff]  }
   0xd   :  { %449 = vmatprep.subr.bf16.mxu1 %v531_v1  ;;  %457 = vmatprep.subr.bf16.mxu0 %v531_v1  ;;  %v392_v14 = vld [vmem:[%s691_s2] ss:$0 sm:$0xff]  ;;  %v501_v22 = vld [vmem:[%s694_s5 + $0x30] sm:$0xff]   ;;  %v502_v23 = vld [vmem:[%s694_s5 + $0x38] sm:$0xff]  }
   0xe   :  { %v503_v24 = vld [vmem:[%s696_s7] sm:$0xff]   ;;  %v504_v25 = vld [vmem:[%s696_s7 + $0x8] sm:$0xff]   ;;  %v505_v34 = vld [vmem:[%s696_s7 + $0x10] sm:$0xff]  }
   0xf   :  { %v395_v26 = vld [vmem:[%s693_s4] ss:$0 sm:$0xff]  ;;  %v506_v35 = vld [vmem:[%s696_s7 + $0x18] sm:$0xff]   ;;  %s384_s7 = sshll.u32 %s533_s24, 4  ;;  %s385_s7 = int_to_ptr.vmem [resolvable:$true] %s384_s7 }
  0x10   :  { %450 = vmatpush3.bf16.msra.mxu1 %v494_v7  ;;  %458 = vmatpush3.bf16.msra.mxu0 %v496_v9  ;;  %v401_v36 = vld [vmem:[%s695_s6] ss:$0 sm:$0xff]  ;;  %s507_s6 = scalar_lea.vmem %s385_s7, 128  ;;  %p512_p1 = scmp.lt.s32.totalorder %s385_s7, %s385_s7 }
  0x11   :  { %475 = vmatprep.subr.bf16.mxu1 %v531_v1  ;;  %459 = vmatprep.subr.bf16.mxu0 %v531_v1  ;;  %v410_v44 = vld [vmem:[%s697_s8] ss:$0 sm:$0xff]  ;;  %p508_p0 = scmp.ne.s32.totalorder %s385_s7, %s507_s6  ;;  %p513_p2 = scmp.lt.s32.totalorder %s507_s6, %s507_s6 }
  0x13   :  { %p514_p3 = por %p513_p2, %p512_p1 }
  0x14   :  { %460 = vmatpush3.bf16.msra.mxu0 %v497_v10 }
  0x15   :  { %461 = vmatprep.subr.bf16.mxu0 %v531_v1  ;;  %p515_p4 = pnand %p514_p3, %p508_p0 }
  0x18   :  { %462 = vmatpush3.bf16.msra.mxu0 %v498_v11 }
  0x19   :  { %463 = vmatprep.subr.bf16.mxu0 %v531_v1 }
  0x1c   :  { %464 = vmatpush3.bf16.msra.mxu0 %v499_v12 }
  0x1d   :  { %465 = vmatprep.subr.bf16.mxu0 %v531_v1 }
  0x20   :  { %466 = vmatpush3.bf16.msra.mxu0 %v500_v13 }
  0x21   :  { %467 = vmatprep.subr.bf16.mxu0 %v531_v1 }
  0x24   :  { %468 = vmatpush3.bf16.msra.mxu0 %v501_v22 }
  0x25   :  { %469 = vmatprep.subr.bf16.mxu0 %v531_v1 }
  0x28   :  { %470 = vmatpush3.bf16.msra.mxu0 %v502_v23 }
  0xd8   :  { %v89_v15 = vpop.f32.mrb[0].mxu0 }
  0xd9   :  { %v90_v16 = vadd.f32 %v392_v14, %v89_v15  ;;  %v441_v17 = vpop.f32.mrb[1].mxu0 }
  0xda   :  { %v92_v18 = vpop.f32.mrb[2].mxu0 }
  0xdb   :  { %v95_v19 = vmax.f32 %v90_v16, 0.0  ;;  %v442_v20 = vpop.f32.mrb[3].mxu0 }
  0xdd   :  { %v96_v21 = vpack.c.bf16 %v95_v19, %v95_v19 }
  0xdf   :  { %452 = vmatmul.mubr.msk.bf16.vlgmr.msra.gmra.mrb[0].mxu1 %vm136_vm2, %v96_v21 }
  0xe0   :  { %483 = vmatprep.mubr.msk.bf16.mxu1 %vm532_vm1, %v531_v1  ;;  %476 = vmatpush3.bf16.msra.mxu1 %v503_v24 }
  0xe1   :  { %477 = vmatprep.subr.bf16.mxu1 %v531_v1 }
  0xe4   :  { %478 = vmatpush3.bf16.msra.mxu1 %v504_v25 }
  0xe5   :  { %479 = vmatprep.subr.bf16.mxu1 %v531_v1 }
  0xe8   :  { %480 = vmatpush3.bf16.msra.mxu1 %v505_v34 }
  0xe9   :  { %481 = vmatprep.subr.bf16.mxu1 %v531_v1 }
  0xec   :  { %482 = vmatpush3.bf16.msra.mxu1 %v506_v35 }
 0x1b2   :  { %v174_v27 = vpop.f32.mrb[0].mxu1 }
 0x1b3   :  { %v175_v28 = vadd.f32 %v395_v26, %v174_v27  ;;  %v453_v29 = vpop.f32.mrb[1].mxu1 }
 0x1b4   :  { %v177_v30 = vpop.f32.mrb[2].mxu1 }
 0x1b5   :  { %v180_v31 = vmax.f32 %v175_v28, 0.0  ;;  %v454_v32 = vpop.f32.mrb[3].mxu1 }
 0x1b7   :  { %v181_v33 = vpack.c.bf16 %v180_v31, %v180_v31 }
 0x1b9   :  { %472 = vmatmul.mubr.bf16.vlgmr.msra.gmra.mrb[4].mxu0 %v181_v33 }
 0x28c   :  { %v287_v37 = vpop.f32.mrb[4].mxu0 }
 0x28d   :  { %v288_v38 = vadd.f32 %v401_v36, %v287_v37  ;;  %v473_v39 = vpop.f32.mrb[5].mxu0 }
 0x28e   :  { %v290_v40 = vpop.f32.mrb[6].mxu0 }
 0x28f   :  { %v293_v41 = vmax.f32 %v288_v38, 0.0  ;;  %v474_v42 = vpop.f32.mrb[7].mxu0 }
 0x291   :  { %v294_v43 = vpack.c.bf16 %v293_v41, %v293_v41 }
 0x293   :  { %484 = vmatmul.mubr.msk.bf16.vlgmr.msra.gmra.mrb[4].mxu1 %vm136_vm2, %v294_v43 }
 0x366   :  { %v371_v45 = vpop.f32.mrb[4].mxu1 }
 0x367   :  { %v372_v46 = vadd.f32 %v410_v44, %v371_v45  ;;  %v485_v47 = vpop.f32.mrb[5].mxu1 }
 0x368   :  { %v374_v48 = vpop.f32.mrb[6].mxu1 }
 0x369   :  { %377 = vst [vmem:[#allocation2] sm:$0xff] %v372_v46  ;;  %v486_v49 = vpop.f32.mrb[7].mxu1 }
 0x36a   :  { %518 = shalt.err (!%p515_p4)
}
 0x36b   :  { %s519_s8 = scalar_lea.hbm %s698_s9, 128 }
 0x36c   :  { %p520_p5 = scmp.ne.s32.totalorder %s698_s9, %s519_s8  ;;  %p523_p6 = scmp.lt.u32.totalorder %s519_s8, %s698_s9 }
 0x36e   :  { %p525_p7 = pnand %p523_p6, %p520_p5 }
 0x370   :  { %528 = shalt.err (!%p525_p7)
}
 0x371   :  { %387 = dma.vmem_to_hbm [thread:$0]  %s385_s7, 128, %s698_s9, [#allocation3]  }
 0x372   :  { %529 = dma.done.wait [#allocation3], 128  }
 0x373   :  { %530 = vsyncadd [#allocation3], 4294967168 }
 0x374   :  { %391 = vsyncpa [#allocation3], 1 }

</bundles_post_ra>
